<compile_context>
chip_gen: v6e
topology: v6e:2x2x1
jax: 0.10.0
libtpu: 0.0.40
codegen_flags: <defaults>
</compile_context>

<pallas_src>
import functools
import math

import jax
import jax.numpy as jnp
import numpy as np
from jax.experimental import pallas as pl
from jax.experimental.pallas import tpu as pltpu

LN_EPS = 1e-5
_SELECT_GATHER_MAX_ROWS = 32     # above this, use the bf16 one-hot MXU gather


def _round_up(x, m):
    return ((x + m - 1) // m) * m


def _ceil_div(a, b):
    return -(-a // b)


def _itemsize(dtype):
    return np.dtype(dtype).itemsize


def _layernorm(v, g, b, eps=LN_EPS):
    mu = jnp.mean(v, axis=-1, keepdims=True)
    var = jnp.mean((v - mu) ** 2, axis=-1, keepdims=True)
    return (v - mu) * jax.lax.rsqrt(var + eps) * g + b


def _neural_embed_kernel(spikes_ref, ids_ref, w1_ref, b1_ref, w2_ref, tbl_ref,
                         o_ref, *, select_gather, gelu_tanh):
    # embed_spikes: Linear(C -> input_dim); cast to bf16 at the MXU input
    # (in-kernel VPU cast, hidden under the DMA), f32 accumulation.
    x = spikes_ref[...].astype(w1_ref.dtype)
    h = jnp.dot(x, w1_ref[...], preferred_element_type=jnp.float32) + b1_ref[...]

    # act: GELU.  tanh form routes the transcendental to the otherwise-idle EUP.
    h = jax.nn.gelu(h, approximate=gelu_tanh)

    # projection: Linear(input_dim -> H).  `scale` is pre-folded into w2 and b2
    # is pre-folded into the positional table, so this is a bare matmul.
    y = jnp.dot(h.astype(w2_ref.dtype), w2_ref[...],
                preferred_element_type=jnp.float32)

    # Positional embeddings: combined (already LayerNorm'ed) table resident in
    # VMEM, gathered by the fused space/time id.  NOTE: an out-of-range id
    # silently contributes zero (incl. the folded b2); garbage tail rows from a
    # partial last block rely on being discarded by the caller.
    ids = ids_ref[...]                         # (rows, 1) int32
    n_rows = tbl_ref.shape[0]
    if select_gather:
        tbl = tbl_ref[...]                     # tiny, f32, exact
        pos = jnp.zeros_like(y)
        for r in range(n_rows):                # static short unroll: VPU selects
            pos = jnp.where(ids == r, tbl[r][None, :], pos)
        y = y + pos
    else:
        # Larger tables: one-hot matmul on the (idle) MXU; bf16 avoids the f32
        # multi-pass (~4e-3 rel rounding on the positional term only).
        oh = (ids == jax.lax.broadcasted_iota(
            jnp.int32, (ids.shape[0], n_rows), 1)).astype(jnp.bfloat16)
        y = y + jnp.dot(oh, tbl_ref[...].astype(jnp.bfloat16),
                        preferred_element_type=jnp.float32)

    o_ref[...] = y.astype(o_ref.dtype)


def neural_embedding_forward(spikes, spacestamps, timestamps,
                             space_attn_mask, time_attn_mask, params,
                             *, hidden_size, tile_m=None,
                             compute_dtype=jnp.bfloat16,
                             out_dtype=jnp.bfloat16,
                             gelu_tanh=True,
                             lane_pad_output=None,
                             single_buffer_weights=True):
    """spikes: (B, T, C); spacestamps/timestamps: (B, T) int.

    Returns (x (B, T, H) in `out_dtype`, space_attn_mask, time_attn_mask,
    spacestamps, timestamps), matching the module's eval-mode forward for the
    linear/gelu/no-prompt/no-session/no-region configuration.
    """
    B, T, C = spikes.shape
    H = hidden_size
    D = params["w1"].shape[1]                     # input_dim
    M = B * T

    # ---- output lane layout --------------------------------------------------
    # Lane-dense (zero-pad H to a multiple of 128) only when it doesn't inflate
    # the write stream: for H < 128 true-H masked stores beat 4x padded writes
    # plus a post-kernel slice copy (esp. on v5e's HBM bandwidth).
    if lane_pad_output is None:
        lane_pad_output = H >= 128
    H_out = _round_up(H, 128) if lane_pad_output else H

    # ---- row tiling -----------------------------------------------------------
    if tile_m is None:
        tile_m = 256 if H_out >= 1024 else 512    # VMEM headroom on v7x at big H
    # Keep the grid >= 2 so both v7x TensorCores get work under "parallel".
    tile_m = max(8, min(tile_m, _round_up(_ceil_div(M, 2), 8)))
    grid = (pl.cdiv(M, tile_m),)                  # partial tail block is masked

    # ---- host-side prep (weights / tiny tables only; no pass over spikes) ----
    scale = jnp.asarray(params["scale"], jnp.float32)
    w1 = params["w1"].astype(compute_dtype)
    b1 = params["b1"].reshape(1, D).astype(jnp.float32)
    w2s = (params["w2"] * scale).astype(compute_dtype)     # scale folded into w2

    # Combined positional table (LayerNorm commutes with the embedding gather).
    # Assumes n_sp * n_tm stays modest (<= a few hundred rows) — true for stpatch.
    n_sp = params["space_table"].shape[0]
    n_tm = params["time_table"].shape[0]
    sp_ln = _layernorm(params["space_table"], params["space_ln_g"], params["space_ln_b"])
    tm_ln = _layernorm(params["time_table"], params["time_ln_g"], params["time_ln_b"])
    pos_tbl = (sp_ln[:, None, :] + tm_ln[None, :, :]
               + params["b2"][None, None, :]).reshape(n_sp * n_tm, H).astype(jnp.float32)
    n_rows = n_sp * n_tm
    select_gather = n_rows <= _SELECT_GATHER_MAX_ROWS

    if H_out > H:                                  # zero-pad H-wide params only
        w2s = jnp.pad(w2s, ((0, 0), (0, H_out - H)))
        pos_tbl = jnp.pad(pos_tbl, ((0, 0), (0, H_out - H)))

    spikes2d = spikes.reshape(M, C)                # raw dtype; cast in-kernel
    ids = (spacestamps.astype(jnp.int32) * n_tm
           + timestamps.astype(jnp.int32)).reshape(M, 1)

    kernel = functools.partial(_neural_embed_kernel,
                               select_gather=select_gather, gelu_tanh=gelu_tanh)

    # ---- scheduling hints ------------------------------------------------------
    flops = 2 * M * (C * D + D * H_out)
    if not select_gather:
        flops += 2 * M * n_rows * H_out
    cost = pl.CostEstimate(
        flops=flops,
        transcendentals=M * D,
        bytes_accessed=(M * C * _itemsize(spikes.dtype) + M * 4
                        + w1.size * _itemsize(compute_dtype) + D * 4
                        + w2s.size * _itemsize(compute_dtype) + pos_tbl.size * 4
                        + M * H_out * _itemsize(out_dtype)))

    def _tile_bytes(rows, cols, dtype):
        return _round_up(rows, 8) * _round_up(cols, 128) * _itemsize(dtype)

    def _vmem_limit(const_buffers):
        stream = (_tile_bytes(tile_m, C, spikes.dtype)
                  + _tile_bytes(tile_m, 1, jnp.int32)
                  + _tile_bytes(tile_m, H_out, out_dtype))
        consts = (_tile_bytes(C, D, compute_dtype) + _tile_bytes(1, D, jnp.float32)
                  + _tile_bytes(D, H_out, compute_dtype)
                  + _tile_bytes(n_rows, H_out, jnp.float32))
        # double-buffered streams + const buffers + headroom for f32 temporaries.
        need = (2 * stream + const_buffers * consts
                + 4 * _tile_bytes(tile_m, max(H_out, D), jnp.float32) + (2 << 20))
        return int(min(max(need, 32 << 20), 64 << 20))

    def _run(single_buf):
        def _const_spec(shape):
            if single_buf:
                # Constant-index blocks: one resident buffer is enough.
                return pl.BlockSpec(shape, lambda *_: (0,) * len(shape),
                                    pipeline_mode=pl.Buffered(1))
            return pl.BlockSpec(shape, lambda *_: (0,) * len(shape))

        grid_spec = pltpu.PrefetchScalarGridSpec(
            num_scalar_prefetch=0,
            grid=grid,
            in_specs=[
                pl.BlockSpec((tile_m, C), lambda i: (i, 0)),   # spikes tile
                pl.BlockSpec((tile_m, 1), lambda i: (i, 0)),   # fused space/time ids
                _const_spec(w1.shape),                         # w1       (compute dtype)
                _const_spec(b1.shape),                         # b1       (f32)
                _const_spec(w2s.shape),                        # scale*w2 (compute dtype)
                _const_spec(pos_tbl.shape),                    # fused LN pos table + b2 (f32)
            ],
            out_specs=pl.BlockSpec((tile_m, H_out), lambda i: (i, 0)),
        )
        return pl.pallas_call(
            kernel,
            out_shape=jax.ShapeDtypeStruct((M, H_out), out_dtype),
            grid_spec=grid_spec,
            compiler_params=pltpu.CompilerParams(
                dimension_semantics=("parallel",),
                vmem_limit_bytes=_vmem_limit(1 if single_buf else 2)),
            cost_estimate=cost,
        )(spikes2d, ids, w1, b1, w2s, pos_tbl)

    if single_buffer_weights:
        try:
            out = _run(True)
        except Exception:
            # Fallback if this JAX build rejects pl.Buffered on the main
            # pallas_call pipeline: keep the default double buffering.
            out = _run(False)
    else:
        out = _run(False)

    x = (out[:, :H] if H_out > H else out).reshape(B, T, H)
    # TODO(synk): prompt / session / region branches (pure embedding+concat+pad
    # glue) and train-mode dropout are disabled in this config; left to XLA.
    return x, space_attn_mask, time_attn_mask, spacestamps, timestamps


def _reference(spikes, spacestamps, timestamps, params, compute_dtype, gelu_tanh):
    """Pure-JAX reference of the module math, deliberately UNfused (separate
    scale multiply, b2 add and two positional gathers) with the same bf16
    MXU-input casts the kernel applies — verifies the kernel's algebraic folds."""
    f32 = jnp.float32
    cast = lambda a: a.astype(compute_dtype).astype(f32)
    h = cast(spikes) @ cast(params["w1"]) + params["b1"]
    h = jax.nn.gelu(h, approximate=gelu_tanh) * params["scale"]
    y = cast(h) @ cast(params["w2"]) + params["b2"]
    se = _layernorm(params["space_table"], params["space_ln_g"], params["space_ln_b"])
    te = _layernorm(params["time_table"], params["time_ln_g"], params["time_ln_b"])
    return y + se[spacestamps] + te[timestamps]


if __name__ == "__main__":
    # Module hyperparameters (small, consistent with the PyTorch __init__).
    hidden_size = 32
    max_space_length = 8      # n_neurons
    n_timesteps = 8
    max_space_F = 4
    max_time_F = 2
    mult = 2

    n_space_patches = math.ceil(max_space_length / max_space_F)   # 2
    n_time_patches = math.ceil(n_timesteps / max_time_F)          # 4
    n_channels = max_time_F * max_space_F                         # 8
    input_dim = n_channels * mult                                 # 16
    scale = hidden_size ** 0.5

    B = 2
    T = n_time_patches * n_space_patches                          # 8 patches/sample
    C = n_channels

    key = jax.random.PRNGKey(0)
    ks = jax.random.split(key, 8)

    params = {
        "w1": jax.random.normal(ks[0], (C, input_dim), jnp.float32) * 0.1,
        "b1": jax.random.normal(ks[1], (input_dim,), jnp.float32) * 0.01,
        "w2": jax.random.normal(ks[2], (input_dim, hidden_size), jnp.float32) * 0.1,
        "b2": jax.random.normal(ks[3], (hidden_size,), jnp.float32) * 0.01,
        "space_table": jax.random.normal(ks[4], (n_space_patches, hidden_size), jnp.float32),
        "space_ln_g": jnp.ones((hidden_size,), jnp.float32),
        "space_ln_b": jnp.zeros((hidden_size,), jnp.float32),
        "time_table": jax.random.normal(ks[5], (n_time_patches, hidden_size), jnp.float32),
        "time_ln_g": jnp.ones((hidden_size,), jnp.float32),
        "time_ln_b": jnp.zeros((hidden_size,), jnp.float32),
        "scale": scale,
    }

    spikes = jax.random.normal(ks[6], (B, T, C), jnp.float32)
    # Patch order: time-major over (n_time_patches, n_space_patches).
    spacestamps = jnp.tile(jnp.arange(n_space_patches, dtype=jnp.int32), n_time_patches)
    spacestamps = jnp.broadcast_to(spacestamps, (B, T))
    timestamps = jnp.repeat(jnp.arange(n_time_patches, dtype=jnp.int32), n_space_patches)
    timestamps = jnp.broadcast_to(timestamps, (B, T))
    space_attn_mask = jnp.ones((B, T), jnp.int32)
    time_attn_mask = jnp.ones((B, T), jnp.int32)

    x, sm, tmask, ss, ts = neural_embedding_forward(
        spikes, spacestamps, timestamps, space_attn_mask, time_attn_mask,
        params, hidden_size=hidden_size,
        compute_dtype=jnp.bfloat16, out_dtype=jnp.bfloat16, gelu_tanh=True)
    jax.block_until_ready(x)

    ref = _reference(spikes, spacestamps, timestamps, params,
                     compute_dtype=jnp.bfloat16, gelu_tanh=True)
    # Tolerance absorbs bf16 output rounding and the (scale->w2, b2->table)
    # fold-order quantization differences; the reference itself is unfused.
    np.testing.assert_allclose(np.asarray(x.astype(jnp.float32)),
                               np.asarray(ref), rtol=1e-2, atol=1e-2)

    print("KERNEL_OK")
</pallas_src>

<mosaic_0001>
module attributes {stable_mosaic.version = 11 : i64} {
  func.func @_neural_embed_kernel(%arg0: i32, %arg1: memref<8x8xf32, #tpu.memory_space<vmem>>, %arg2: memref<8x1xi32, #tpu.memory_space<vmem>>, %arg3: memref<8x16xbf16, #tpu.memory_space<vmem>>, %arg4: memref<1x16xf32, #tpu.memory_space<vmem>>, %arg5: memref<16x32xbf16, #tpu.memory_space<vmem>>, %arg6: memref<8x32xf32, #tpu.memory_space<vmem>>, %arg7: memref<8x32xbf16, #tpu.memory_space<vmem>>) attributes {dimension_semantics = [#tpu.dimension_semantics<parallel>], iteration_bounds = array<i64: 2>, scalar_prefetch = 0 : i64, scratch_operands = 0 : i64, tpu.core_type = #tpu.core_type<tc>, window_params = [{transform_indices = @transform_0, window_bounds = array<i64: 8, 8>}, {transform_indices = @transform_1, window_bounds = array<i64: 8, 1>}, {pipeline_mode = #tpu.pipeline_mode<synchronous>, transform_indices = @transform_2, window_bounds = array<i64: 8, 16>}, {pipeline_mode = #tpu.pipeline_mode<synchronous>, transform_indices = @transform_3, window_bounds = array<i64: 1, 16>}, {pipeline_mode = #tpu.pipeline_mode<synchronous>, transform_indices = @transform_4, window_bounds = array<i64: 16, 32>}, {pipeline_mode = #tpu.pipeline_mode<synchronous>, transform_indices = @transform_5, window_bounds = array<i64: 8, 32>}, {transform_indices = @transform_6, window_bounds = array<i64: 8, 32>}]} {
    %c0 = arith.constant 0 : index
    %c0_0 = arith.constant 0 : index
    %0 = vector.load %arg1[%c0, %c0_0] : memref<8x8xf32, #tpu.memory_space<vmem>>, vector<8x8xf32>
    %1 = arith.truncf %0 : vector<8x8xf32> to vector<8x8xbf16>
    %c0_1 = arith.constant 0 : index
    %c0_2 = arith.constant 0 : index
    %2 = vector.load %arg3[%c0_1, %c0_2] : memref<8x16xbf16, #tpu.memory_space<vmem>>, vector<8x16xbf16>
    %cst = arith.constant dense<0.000000e+00> : vector<8x16xf32>
    %3 = tpu.matmul %1, %2, %cst {dimension_numbers = #tpu.dot_dimension_numbers<[1], [0], [0], [1], [0, 0, 1, 1], [], []>} : vector<8x8xbf16>, vector<8x16xbf16>, vector<8x16xf32> -> vector<8x16xf32>
    %c0_3 = arith.constant 0 : index
    %c0_4 = arith.constant 0 : index
    %4 = vector.load %arg4[%c0_3, %c0_4] : memref<1x16xf32, #tpu.memory_space<vmem>>, vector<1x16xf32>
    %5 = vector.broadcast %4 : vector<1x16xf32> to vector<8x16xf32>
    %6 = arith.addf %3, %5 : vector<8x16xf32>
    %7 = arith.mulf %6, %6 : vector<8x16xf32>
    %8 = arith.mulf %6, %7 : vector<8x16xf32>
    %cst_5 = arith.constant 4.471500e-02 : f32
    %9 = vector.broadcast %cst_5 : f32 to vector<8x16xf32>
    %10 = arith.mulf %9, %8 : vector<8x16xf32>
    %11 = arith.addf %6, %10 : vector<8x16xf32>
    %cst_6 = arith.constant 0.797884583 : f32
    %12 = vector.broadcast %cst_6 : f32 to vector<8x16xf32>
    %13 = arith.mulf %12, %11 : vector<8x16xf32>
    %14 = math.tanh %13 : vector<8x16xf32>
    %cst_7 = arith.constant 1.000000e+00 : f32
    %15 = vector.broadcast %cst_7 : f32 to vector<8x16xf32>
    %16 = arith.addf %15, %14 : vector<8x16xf32>
    %cst_8 = arith.constant 5.000000e-01 : f32
    %17 = vector.broadcast %cst_8 : f32 to vector<8x16xf32>
    %18 = arith.mulf %17, %16 : vector<8x16xf32>
    %19 = arith.mulf %6, %18 : vector<8x16xf32>
    %20 = arith.truncf %19 : vector<8x16xf32> to vector<8x16xbf16>
    %c0_9 = arith.constant 0 : index
    %c0_10 = arith.constant 0 : index
    %21 = vector.load %arg5[%c0_9, %c0_10] : memref<16x32xbf16, #tpu.memory_space<vmem>>, vector<16x32xbf16>
    %cst_11 = arith.constant dense<0.000000e+00> : vector<8x32xf32>
    %22 = tpu.matmul %20, %21, %cst_11 {dimension_numbers = #tpu.dot_dimension_numbers<[1], [0], [0], [1], [0, 0, 1, 1], [], []>} : vector<8x16xbf16>, vector<16x32xbf16>, vector<8x32xf32> -> vector<8x32xf32>
    %c0_12 = arith.constant 0 : index
    %c0_13 = arith.constant 0 : index
    %23 = vector.load %arg2[%c0_12, %c0_13] : memref<8x1xi32, #tpu.memory_space<vmem>>, vector<8x1xi32>
    %c0_14 = arith.constant 0 : index
    %c0_15 = arith.constant 0 : index
    %24 = vector.load %arg6[%c0_14, %c0_15] : memref<8x32xf32, #tpu.memory_space<vmem>>, vector<8x32xf32>
    %cst_16 = arith.constant 0.000000e+00 : f32
    %25 = vector.broadcast %cst_16 : f32 to vector<8x32xf32>
    %c0_i32 = arith.constant 0 : i32
    %26 = vector.broadcast %c0_i32 : i32 to vector<8x1xi32>
    %27 = arith.cmpi eq, %23, %26 : vector<8x1xi32>
    %28 = vector.extract_strided_slice %24 {offsets = [0, 0], sizes = [1, 32], strides = [1, 1]} : vector<8x32xf32> to vector<1x32xf32>
    %29 = vector.shape_cast %28 : vector<1x32xf32> to vector<32xf32>
    %30 = vector.shape_cast %29 : vector<32xf32> to vector<1x32xf32>
    %31 = vector.shape_cast %27 : vector<8x1xi1> to vector<8x1xi1>
    %32 = vector.broadcast %31 : vector<8x1xi1> to vector<8x32xi1>
    %33 = vector.shape_cast %30 : vector<1x32xf32> to vector<1x32xf32>
    %34 = vector.broadcast %33 : vector<1x32xf32> to vector<8x32xf32>
    %35 = arith.select %32, %34, %25 : vector<8x32xi1>, vector<8x32xf32>
    %c1_i32 = arith.constant 1 : i32
    %36 = vector.broadcast %c1_i32 : i32 to vector<8x1xi32>
    %37 = arith.cmpi eq, %23, %36 : vector<8x1xi32>
    %38 = vector.extract_strided_slice %24 {offsets = [1, 0], sizes = [1, 32], strides = [1, 1]} : vector<8x32xf32> to vector<1x32xf32>
    %39 = vector.shape_cast %38 : vector<1x32xf32> to vector<32xf32>
    %40 = vector.shape_cast %39 : vector<32xf32> to vector<1x32xf32>
    %41 = vector.shape_cast %37 : vector<8x1xi1> to vector<8x1xi1>
    %42 = vector.broadcast %41 : vector<8x1xi1> to vector<8x32xi1>
    %43 = vector.shape_cast %40 : vector<1x32xf32> to vector<1x32xf32>
    %44 = vector.broadcast %43 : vector<1x32xf32> to vector<8x32xf32>
    %45 = arith.select %42, %44, %35 : vector<8x32xi1>, vector<8x32xf32>
    %c2_i32 = arith.constant 2 : i32
    %46 = vector.broadcast %c2_i32 : i32 to vector<8x1xi32>
    %47 = arith.cmpi eq, %23, %46 : vector<8x1xi32>
    %48 = vector.extract_strided_slice %24 {offsets = [2, 0], sizes = [1, 32], strides = [1, 1]} : vector<8x32xf32> to vector<1x32xf32>
    %49 = vector.shape_cast %48 : vector<1x32xf32> to vector<32xf32>
    %50 = vector.shape_cast %49 : vector<32xf32> to vector<1x32xf32>
    %51 = vector.shape_cast %47 : vector<8x1xi1> to vector<8x1xi1>
    %52 = vector.broadcast %51 : vector<8x1xi1> to vector<8x32xi1>
    %53 = vector.shape_cast %50 : vector<1x32xf32> to vector<1x32xf32>
    %54 = vector.broadcast %53 : vector<1x32xf32> to vector<8x32xf32>
    %55 = arith.select %52, %54, %45 : vector<8x32xi1>, vector<8x32xf32>
    %c3_i32 = arith.constant 3 : i32
    %56 = vector.broadcast %c3_i32 : i32 to vector<8x1xi32>
    %57 = arith.cmpi eq, %23, %56 : vector<8x1xi32>
    %58 = vector.extract_strided_slice %24 {offsets = [3, 0], sizes = [1, 32], strides = [1, 1]} : vector<8x32xf32> to vector<1x32xf32>
    %59 = vector.shape_cast %58 : vector<1x32xf32> to vector<32xf32>
    %60 = vector.shape_cast %59 : vector<32xf32> to vector<1x32xf32>
    %61 = vector.shape_cast %57 : vector<8x1xi1> to vector<8x1xi1>
    %62 = vector.broadcast %61 : vector<8x1xi1> to vector<8x32xi1>
    %63 = vector.shape_cast %60 : vector<1x32xf32> to vector<1x32xf32>
    %64 = vector.broadcast %63 : vector<1x32xf32> to vector<8x32xf32>
    %65 = arith.select %62, %64, %55 : vector<8x32xi1>, vector<8x32xf32>
    %c4_i32 = arith.constant 4 : i32
    %66 = vector.broadcast %c4_i32 : i32 to vector<8x1xi32>
    %67 = arith.cmpi eq, %23, %66 : vector<8x1xi32>
    %68 = vector.extract_strided_slice %24 {offsets = [4, 0], sizes = [1, 32], strides = [1, 1]} : vector<8x32xf32> to vector<1x32xf32>
    %69 = vector.shape_cast %68 : vector<1x32xf32> to vector<32xf32>
    %70 = vector.shape_cast %69 : vector<32xf32> to vector<1x32xf32>
    %71 = vector.shape_cast %67 : vector<8x1xi1> to vector<8x1xi1>
    %72 = vector.broadcast %71 : vector<8x1xi1> to vector<8x32xi1>
    %73 = vector.shape_cast %70 : vector<1x32xf32> to vector<1x32xf32>
    %74 = vector.broadcast %73 : vector<1x32xf32> to vector<8x32xf32>
    %75 = arith.select %72, %74, %65 : vector<8x32xi1>, vector<8x32xf32>
    %c5_i32 = arith.constant 5 : i32
    %76 = vector.broadcast %c5_i32 : i32 to vector<8x1xi32>
    %77 = arith.cmpi eq, %23, %76 : vector<8x1xi32>
    %78 = vector.extract_strided_slice %24 {offsets = [5, 0], sizes = [1, 32], strides = [1, 1]} : vector<8x32xf32> to vector<1x32xf32>
    %79 = vector.shape_cast %78 : vector<1x32xf32> to vector<32xf32>
    %80 = vector.shape_cast %79 : vector<32xf32> to vector<1x32xf32>
    %81 = vector.shape_cast %77 : vector<8x1xi1> to vector<8x1xi1>
    %82 = vector.broadcast %81 : vector<8x1xi1> to vector<8x32xi1>
    %83 = vector.shape_cast %80 : vector<1x32xf32> to vector<1x32xf32>
    %84 = vector.broadcast %83 : vector<1x32xf32> to vector<8x32xf32>
    %85 = arith.select %82, %84, %75 : vector<8x32xi1>, vector<8x32xf32>
    %c6_i32 = arith.constant 6 : i32
    %86 = vector.broadcast %c6_i32 : i32 to vector<8x1xi32>
    %87 = arith.cmpi eq, %23, %86 : vector<8x1xi32>
    %88 = vector.extract_strided_slice %24 {offsets = [6, 0], sizes = [1, 32], strides = [1, 1]} : vector<8x32xf32> to vector<1x32xf32>
    %89 = vector.shape_cast %88 : vector<1x32xf32> to vector<32xf32>
    %90 = vector.shape_cast %89 : vector<32xf32> to vector<1x32xf32>
    %91 = vector.shape_cast %87 : vector<8x1xi1> to vector<8x1xi1>
    %92 = vector.broadcast %91 : vector<8x1xi1> to vector<8x32xi1>
    %93 = vector.shape_cast %90 : vector<1x32xf32> to vector<1x32xf32>
    %94 = vector.broadcast %93 : vector<1x32xf32> to vector<8x32xf32>
    %95 = arith.select %92, %94, %85 : vector<8x32xi1>, vector<8x32xf32>
    %c7_i32 = arith.constant 7 : i32
    %96 = vector.broadcast %c7_i32 : i32 to vector<8x1xi32>
    %97 = arith.cmpi eq, %23, %96 : vector<8x1xi32>
    %98 = vector.extract_strided_slice %24 {offsets = [7, 0], sizes = [1, 32], strides = [1, 1]} : vector<8x32xf32> to vector<1x32xf32>
    %99 = vector.shape_cast %98 : vector<1x32xf32> to vector<32xf32>
    %100 = vector.shape_cast %99 : vector<32xf32> to vector<1x32xf32>
    %101 = vector.shape_cast %97 : vector<8x1xi1> to vector<8x1xi1>
    %102 = vector.broadcast %101 : vector<8x1xi1> to vector<8x32xi1>
    %103 = vector.shape_cast %100 : vector<1x32xf32> to vector<1x32xf32>
    %104 = vector.broadcast %103 : vector<1x32xf32> to vector<8x32xf32>
    %105 = arith.select %102, %104, %95 : vector<8x32xi1>, vector<8x32xf32>
    %106 = arith.addf %22, %105 : vector<8x32xf32>
    %107 = arith.truncf %106 : vector<8x32xf32> to vector<8x32xbf16>
    %c0_17 = arith.constant 0 : index
    %c0_18 = arith.constant 0 : index
    %108 = vector.load %arg7[%c0_17, %c0_18] : memref<8x32xbf16, #tpu.memory_space<vmem>>, vector<8x32xbf16>
    tpu.vector_store %arg7[%c0_17, %c0_18], %107 {strides = array<i32>} : memref<8x32xbf16, #tpu.memory_space<vmem>>, vector<8x32xbf16>,
    return
  }
  func.func @transform_0(%arg0: i32) -> (i32, i32) {
    %c0_i32 = arith.constant 0 : i32
    %c0_i32_0 = arith.constant 0 : i32
    return %arg0, %c0_i32 : i32, i32
  }
  func.func @transform_1(%arg0: i32) -> (i32, i32) {
    %c0_i32 = arith.constant 0 : i32
    %c0_i32_0 = arith.constant 0 : i32
    return %arg0, %c0_i32 : i32, i32
  }
  func.func @transform_2(%arg0: i32) -> (i32, i32) {
    %c0_i32 = arith.constant 0 : i32
    %c0_i32_0 = arith.constant 0 : i32
    %c0_i32_1 = arith.constant 0 : i32
    return %c0_i32, %c0_i32_0 : i32, i32
  }
  func.func @transform_3(%arg0: i32) -> (i32, i32) {
    %c0_i32 = arith.constant 0 : i32
    %c0_i32_0 = arith.constant 0 : i32
    %c0_i32_1 = arith.constant 0 : i32
    return %c0_i32, %c0_i32_0 : i32, i32
  }
  func.func @transform_4(%arg0: i32) -> (i32, i32) {
    %c0_i32 = arith.constant 0 : i32
    %c0_i32_0 = arith.constant 0 : i32
    %c0_i32_1 = arith.constant 0 : i32
    return %c0_i32, %c0_i32_0 : i32, i32
  }
  func.func @transform_5(%arg0: i32) -> (i32, i32) {
    %c0_i32 = arith.constant 0 : i32
    %c0_i32_0 = arith.constant 0 : i32
    %c0_i32_1 = arith.constant 0 : i32
    return %c0_i32, %c0_i32_0 : i32, i32
  }
  func.func @transform_6(%arg0: i32) -> (i32, i32) {
    %c0_i32 = arith.constant 0 : i32
    %c0_i32_0 = arith.constant 0 : i32
    return %arg0, %c0_i32 : i32, i32
  }
}

module attributes {stable_mosaic.version = 11 : i64} {
  func.func @_neural_embed_kernel(%arg0: i32, %arg1: memref<8x8xf32, #tpu.memory_space<vmem>>, %arg2: memref<8x1xi32, #tpu.memory_space<vmem>>, %arg3: memref<8x16xbf16, #tpu.memory_space<vmem>>, %arg4: memref<1x16xf32, #tpu.memory_space<vmem>>, %arg5: memref<16x32xbf16, #tpu.memory_space<vmem>>, %arg6: memref<8x32xf32, #tpu.memory_space<vmem>>, %arg7: memref<8x32xbf16, #tpu.memory_space<vmem>>) attributes {dimension_semantics = [#tpu.dimension_semantics<parallel>], iteration_bounds = array<i64: 2>, scalar_prefetch = 0 : i64, scratch_operands = 0 : i64, tpu.core_type = #tpu.core_type<tc>, window_params = [{transform_indices = @transform_0, window_bounds = array<i64: 8, 8>}, {transform_indices = @transform_1, window_bounds = array<i64: 8, 1>}, {pipeline_mode = #tpu.pipeline_mode<synchronous>, transform_indices = @transform_2, window_bounds = array<i64: 8, 16>}, {pipeline_mode = #tpu.pipeline_mode<synchronous>, transform_indices = @transform_3, window_bounds = array<i64: 1, 16>}, {pipeline_mode = #tpu.pipeline_mode<synchronous>, transform_indices = @transform_4, window_bounds = array<i64: 16, 32>}, {pipeline_mode = #tpu.pipeline_mode<synchronous>, transform_indices = @transform_5, window_bounds = array<i64: 8, 32>}, {transform_indices = @transform_6, window_bounds = array<i64: 8, 32>}]} {
    %c0 = arith.constant 0 : index
    %c0_0 = arith.constant 0 : index
    %0 = vector.load %arg1[%c0, %c0_0] : memref<8x8xf32, #tpu.memory_space<vmem>>, vector<8x8xf32>
    %1 = arith.truncf %0 : vector<8x8xf32> to vector<8x8xbf16>
    %c0_1 = arith.constant 0 : index
    %c0_2 = arith.constant 0 : index
    %2 = vector.load %arg3[%c0_1, %c0_2] : memref<8x16xbf16, #tpu.memory_space<vmem>>, vector<8x16xbf16>
    %cst = arith.constant dense<0.000000e+00> : vector<8x16xf32>
    %3 = tpu.matmul %1, %2, %cst {dimension_numbers = #tpu.dot_dimension_numbers<[1], [0], [0], [1], [0, 0, 1, 1], [], []>} : vector<8x8xbf16>, vector<8x16xbf16>, vector<8x16xf32> -> vector<8x16xf32>
    %c0_3 = arith.constant 0 : index
    %c0_4 = arith.constant 0 : index
    %4 = vector.load %arg4[%c0_3, %c0_4] : memref<1x16xf32, #tpu.memory_space<vmem>>, vector<1x16xf32>
    %5 = vector.broadcast %4 : vector<1x16xf32> to vector<8x16xf32>
    %6 = arith.addf %3, %5 : vector<8x16xf32>
    %7 = arith.mulf %6, %6 : vector<8x16xf32>
    %8 = arith.mulf %6, %7 : vector<8x16xf32>
    %cst_5 = arith.constant 4.471500e-02 : f32
    %9 = vector.broadcast %cst_5 : f32 to vector<8x16xf32>
    %10 = arith.mulf %9, %8 : vector<8x16xf32>
    %11 = arith.addf %6, %10 : vector<8x16xf32>
    %cst_6 = arith.constant 0.797884583 : f32
    %12 = vector.broadcast %cst_6 : f32 to vector<8x16xf32>
    %13 = arith.mulf %12, %11 : vector<8x16xf32>
    %14 = math.tanh %13 : vector<8x16xf32>
    %cst_7 = arith.constant 1.000000e+00 : f32
    %15 = vector.broadcast %cst_7 : f32 to vector<8x16xf32>
    %16 = arith.addf %15, %14 : vector<8x16xf32>
    %cst_8 = arith.constant 5.000000e-01 : f32
    %17 = vector.broadcast %cst_8 : f32 to vector<8x16xf32>
    %18 = arith.mulf %17, %16 : vector<8x16xf32>
    %19 = arith.mulf %6, %18 : vector<8x16xf32>
    %20 = arith.truncf %19 : vector<8x16xf32> to vector<8x16xbf16>
    %c0_9 = arith.constant 0 : index
    %c0_10 = arith.constant 0 : index
    %21 = vector.load %arg5[%c0_9, %c0_10] : memref<16x32xbf16, #tpu.memory_space<vmem>>, vector<16x32xbf16>
    %cst_11 = arith.constant dense<0.000000e+00> : vector<8x32xf32>
    %22 = tpu.matmul %20, %21, %cst_11 {dimension_numbers = #tpu.dot_dimension_numbers<[1], [0], [0], [1], [0, 0, 1, 1], [], []>} : vector<8x16xbf16>, vector<16x32xbf16>, vector<8x32xf32> -> vector<8x32xf32>
    %c0_12 = arith.constant 0 : index
    %c0_13 = arith.constant 0 : index
    %23 = vector.load %arg2[%c0_12, %c0_13] : memref<8x1xi32, #tpu.memory_space<vmem>>, vector<8x1xi32>
    %c0_14 = arith.constant 0 : index
    %c0_15 = arith.constant 0 : index
    %24 = vector.load %arg6[%c0_14, %c0_15] : memref<8x32xf32, #tpu.memory_space<vmem>>, vector<8x32xf32>
    %cst_16 = arith.constant 0.000000e+00 : f32
    %25 = vector.broadcast %cst_16 : f32 to vector<8x32xf32>
    %c0_i32 = arith.constant 0 : i32
    %26 = vector.broadcast %c0_i32 : i32 to vector<8x1xi32>
    %27 = arith.cmpi eq, %23, %26 : vector<8x1xi32>
    %28 = vector.extract_strided_slice %24 {offsets = [0, 0], sizes = [1, 32], strides = [1, 1]} : vector<8x32xf32> to vector<1x32xf32>
    %29 = vector.shape_cast %28 : vector<1x32xf32> to vector<32xf32>
    %30 = vector.shape_cast %29 : vector<32xf32> to vector<1x32xf32>
    %31 = vector.shape_cast %27 : vector<8x1xi1> to vector<8x1xi1>
    %32 = vector.broadcast %31 : vector<8x1xi1> to vector<8x32xi1>
    %33 = vector.shape_cast %30 : vector<1x32xf32> to vector<1x32xf32>
    %34 = vector.broadcast %33 : vector<1x32xf32> to vector<8x32xf32>
    %35 = arith.select %32, %34, %25 : vector<8x32xi1>, vector<8x32xf32>
    %c1_i32 = arith.constant 1 : i32
    %36 = vector.broadcast %c1_i32 : i32 to vector<8x1xi32>
    %37 = arith.cmpi eq, %23, %36 : vector<8x1xi32>
    %38 = vector.extract_strided_slice %24 {offsets = [1, 0], sizes = [1, 32], strides = [1, 1]} : vector<8x32xf32> to vector<1x32xf32>
    %39 = vector.shape_cast %38 : vector<1x32xf32> to vector<32xf32>
    %40 = vector.shape_cast %39 : vector<32xf32> to vector<1x32xf32>
    %41 = vector.shape_cast %37 : vector<8x1xi1> to vector<8x1xi1>
    %42 = vector.broadcast %41 : vector<8x1xi1> to vector<8x32xi1>
    %43 = vector.shape_cast %40 : vector<1x32xf32> to vector<1x32xf32>
    %44 = vector.broadcast %43 : vector<1x32xf32> to vector<8x32xf32>
    %45 = arith.select %42, %44, %35 : vector<8x32xi1>, vector<8x32xf32>
    %c2_i32 = arith.constant 2 : i32
    %46 = vector.broadcast %c2_i32 : i32 to vector<8x1xi32>
    %47 = arith.cmpi eq, %23, %46 : vector<8x1xi32>
    %48 = vector.extract_strided_slice %24 {offsets = [2, 0], sizes = [1, 32], strides = [1, 1]} : vector<8x32xf32> to vector<1x32xf32>
    %49 = vector.shape_cast %48 : vector<1x32xf32> to vector<32xf32>
    %50 = vector.shape_cast %49 : vector<32xf32> to vector<1x32xf32>
    %51 = vector.shape_cast %47 : vector<8x1xi1> to vector<8x1xi1>
    %52 = vector.broadcast %51 : vector<8x1xi1> to vector<8x32xi1>
    %53 = vector.shape_cast %50 : vector<1x32xf32> to vector<1x32xf32>
    %54 = vector.broadcast %53 : vector<1x32xf32> to vector<8x32xf32>
    %55 = arith.select %52, %54, %45 : vector<8x32xi1>, vector<8x32xf32>
    %c3_i32 = arith.constant 3 : i32
    %56 = vector.broadcast %c3_i32 : i32 to vector<8x1xi32>
    %57 = arith.cmpi eq, %23, %56 : vector<8x1xi32>
    %58 = vector.extract_strided_slice %24 {offsets = [3, 0], sizes = [1, 32], strides = [1, 1]} : vector<8x32xf32> to vector<1x32xf32>
    %59 = vector.shape_cast %58 : vector<1x32xf32> to vector<32xf32>
    %60 = vector.shape_cast %59 : vector<32xf32> to vector<1x32xf32>
    %61 = vector.shape_cast %57 : vector<8x1xi1> to vector<8x1xi1>
    %62 = vector.broadcast %61 : vector<8x1xi1> to vector<8x32xi1>
    %63 = vector.shape_cast %60 : vector<1x32xf32> to vector<1x32xf32>
    %64 = vector.broadcast %63 : vector<1x32xf32> to vector<8x32xf32>
    %65 = arith.select %62, %64, %55 : vector<8x32xi1>, vector<8x32xf32>
    %c4_i32 = arith.constant 4 : i32
    %66 = vector.broadcast %c4_i32 : i32 to vector<8x1xi32>
    %67 = arith.cmpi eq, %23, %66 : vector<8x1xi32>
    %68 = vector.extract_strided_slice %24 {offsets = [4, 0], sizes = [1, 32], strides = [1, 1]} : vector<8x32xf32> to vector<1x32xf32>
    %69 = vector.shape_cast %68 : vector<1x32xf32> to vector<32xf32>
    %70 = vector.shape_cast %69 : vector<32xf32> to vector<1x32xf32>
    %71 = vector.shape_cast %67 : vector<8x1xi1> to vector<8x1xi1>
    %72 = vector.broadcast %71 : vector<8x1xi1> to vector<8x32xi1>
    %73 = vector.shape_cast %70 : vector<1x32xf32> to vector<1x32xf32>
    %74 = vector.broadcast %73 : vector<1x32xf32> to vector<8x32xf32>
    %75 = arith.select %72, %74, %65 : vector<8x32xi1>, vector<8x32xf32>
    %c5_i32 = arith.constant 5 : i32
    %76 = vector.broadcast %c5_i32 : i32 to vector<8x1xi32>
    %77 = arith.cmpi eq, %23, %76 : vector<8x1xi32>
    %78 = vector.extract_strided_slice %24 {offsets = [5, 0], sizes = [1, 32], strides = [1, 1]} : vector<8x32xf32> to vector<1x32xf32>
    %79 = vector.shape_cast %78 : vector<1x32xf32> to vector<32xf32>
    %80 = vector.shape_cast %79 : vector<32xf32> to vector<1x32xf32>
    %81 = vector.shape_cast %77 : vector<8x1xi1> to vector<8x1xi1>
    %82 = vector.broadcast %81 : vector<8x1xi1> to vector<8x32xi1>
    %83 = vector.shape_cast %80 : vector<1x32xf32> to vector<1x32xf32>
    %84 = vector.broadcast %83 : vector<1x32xf32> to vector<8x32xf32>
    %85 = arith.select %82, %84, %75 : vector<8x32xi1>, vector<8x32xf32>
    %c6_i32 = arith.constant 6 : i32
    %86 = vector.broadcast %c6_i32 : i32 to vector<8x1xi32>
    %87 = arith.cmpi eq, %23, %86 : vector<8x1xi32>
    %88 = vector.extract_strided_slice %24 {offsets = [6, 0], sizes = [1, 32], strides = [1, 1]} : vector<8x32xf32> to vector<1x32xf32>
    %89 = vector.shape_cast %88 : vector<1x32xf32> to vector<32xf32>
    %90 = vector.shape_cast %89 : vector<32xf32> to vector<1x32xf32>
    %91 = vector.shape_cast %87 : vector<8x1xi1> to vector<8x1xi1>
    %92 = vector.broadcast %91 : vector<8x1xi1> to vector<8x32xi1>
    %93 = vector.shape_cast %90 : vector<1x32xf32> to vector<1x32xf32>
    %94 = vector.broadcast %93 : vector<1x32xf32> to vector<8x32xf32>
    %95 = arith.select %92, %94, %85 : vector<8x32xi1>, vector<8x32xf32>
    %c7_i32 = arith.constant 7 : i32
    %96 = vector.broadcast %c7_i32 : i32 to vector<8x1xi32>
    %97 = arith.cmpi eq, %23, %96 : vector<8x1xi32>
    %98 = vector.extract_strided_slice %24 {offsets = [7, 0], sizes = [1, 32], strides = [1, 1]} : vector<8x32xf32> to vector<1x32xf32>
    %99 = vector.shape_cast %98 : vector<1x32xf32> to vector<32xf32>
    %100 = vector.shape_cast %99 : vector<32xf32> to vector<1x32xf32>
    %101 = vector.shape_cast %97 : vector<8x1xi1> to vector<8x1xi1>
    %102 = vector.broadcast %101 : vector<8x1xi1> to vector<8x32xi1>
    %103 = vector.shape_cast %100 : vector<1x32xf32> to vector<1x32xf32>
    %104 = vector.broadcast %103 : vector<1x32xf32> to vector<8x32xf32>
    %105 = arith.select %102, %104, %95 : vector<8x32xi1>, vector<8x32xf32>
    %106 = arith.addf %22, %105 : vector<8x32xf32>
    %107 = arith.truncf %106 : vector<8x32xf32> to vector<8x32xbf16>
    %c0_17 = arith.constant 0 : index
    %c0_18 = arith.constant 0 : index
    %108 = vector.load %arg7[%c0_17, %c0_18] : memref<8x32xbf16, #tpu.memory_space<vmem>>, vector<8x32xbf16>
    tpu.vector_store %arg7[%c0_17, %c0_18], %107 {strides = array<i32>} : memref<8x32xbf16, #tpu.memory_space<vmem>>, vector<8x32xbf16>,
    return
  }
  func.func @transform_0(%arg0: i32) -> (i32, i32) {
    %c0_i32 = arith.constant 0 : i32
    %c0_i32_0 = arith.constant 0 : i32
    return %arg0, %c0_i32 : i32, i32
  }
  func.func @transform_1(%arg0: i32) -> (i32, i32) {
    %c0_i32 = arith.constant 0 : i32
    %c0_i32_0 = arith.constant 0 : i32
    return %arg0, %c0_i32 : i32, i32
  }
  func.func @transform_2(%arg0: i32) -> (i32, i32) {
    %c0_i32 = arith.constant 0 : i32
    %c0_i32_0 = arith.constant 0 : i32
    %c0_i32_1 = arith.constant 0 : i32
    return %c0_i32, %c0_i32_0 : i32, i32
  }
  func.func @transform_3(%arg0: i32) -> (i32, i32) {
    %c0_i32 = arith.constant 0 : i32
    %c0_i32_0 = arith.constant 0 : i32
    %c0_i32_1 = arith.constant 0 : i32
    return %c0_i32, %c0_i32_0 : i32, i32
  }
  func.func @transform_4(%arg0: i32) -> (i32, i32) {
    %c0_i32 = arith.constant 0 : i32
    %c0_i32_0 = arith.constant 0 : i32
    %c0_i32_1 = arith.constant 0 : i32
    return %c0_i32, %c0_i32_0 : i32, i32
  }
  func.func @transform_5(%arg0: i32) -> (i32, i32) {
    %c0_i32 = arith.constant 0 : i32
    %c0_i32_0 = arith.constant 0 : i32
    %c0_i32_1 = arith.constant 0 : i32
    return %c0_i32, %c0_i32_0 : i32, i32
  }
  func.func @transform_6(%arg0: i32) -> (i32, i32) {
    %c0_i32 = arith.constant 0 : i32
    %c0_i32_0 = arith.constant 0 : i32
    return %arg0, %c0_i32 : i32, i32
  }
}

</mosaic_0001>

<bundles_post_ra>
// kernel: tpu_custom_call.1
= control target key start
LH: loop header
LB: loop body
LE: loop exit
PB: predicated region body
PF: predicated region fallthrough
CT: control target
= control target key end

     0   :  { %11 = vsyncpa [#allocation3], 0  ;;  %s856_s0 = inlined_call_operand.vmem [shape: f32[16,8], index: 0, kind: input, shape index: {}]   ;;  %s857_s1 = inlined_call_operand.vmem [shape: s32[16,1], index: 1, kind: input, shape index: {}]   ;;  %s858_s2 = inlined_call_operand.vmem [shape: bf16[8,16], index: 2, kind: input, shape index: {}]   ;;  %s859_s3 = inlined_call_operand.vmem [shape: f32[1,16], index: 3, kind: input, shape index: {}]   ;;  %s860_s4 = inlined_call_operand.vmem [shape: bf16[16,32], index: 4, kind: input, shape index: {}]   ;;  %s861_s5 = inlined_call_operand.vmem [shape: f32[8,32], index: 5, kind: input, shape index: {}]   ;;  %s862_s6 = inlined_call_operand.hbm [shape: bf16[16,32], index: 6, kind: output, shape index: {}]  }
   0x1   :  { %13 = vsyncpa [#allocation3 + $0x1], 0  ;;  %s742_s21 = smov 0   ;;  %s744_s22 = smov 0  }
   0x2   :  { %s746_s23 = smov 0   ;;  %s748_s24 = smov 0  }
   0x3 LB: > { %s763_s25 = sadd.s32 4294967295, %s701_s24   ;;  %s563_s26 = sadd.s32 4294967294, %s701_s24   ;;  %s701_s24 = sphi %s748_s24, %s868_s24   ;;  %s697_s23 = sphi %s746_s23, %s867_s23   ;;  %s693_s22 = sphi %s744_s22, %s866_s22   ;;  %s689_s21 = sphi %s742_s21, %s865_s21  }
   0x4   : > { %s767_s27 = sadd.s32 1, %s701_s24   ;;  %s162_s28 = sadd.s32 1, %s697_s23 }
   0x5   : > { %s159_s29 = ssub.s32 %s701_s24, %s767_s27  ;;  %p172_p0 = scmp.ne.s32.totalorder %s697_s23, %s693_s22 }
   0x6   : > { %p160_p1 = scmp.eq.s32.totalorder %s159_s29, 0  ;;  %p173_p2 = scmp.eq.s32.totalorder %s763_s25, 1 }
   0x7   : > { %p178_p3 = scmp.ne.s32.totalorder %s693_s22, %s689_s21  ;;  %p179_p4 = scmp.eq.s32.totalorder %s563_s26, 1 }
   0x8   : > { %s778_s30 = scalar_select %p160_p1, %s697_s23, %s162_s28  }
   0x9   : > { %p780_p5 = por %p173_p2, %p172_p0  ;;  %p784_p6 = por %p179_p4, %p178_p3 }
   0xa   : > { %p566_p7 = scmp.ge.s32.totalorder %s701_s24, 1  ;;  %p223_p8 = scmp.lt.s32.totalorder %s701_s24, 3 }
   0xc   : > { %p224_p9 = pnand %p566_p7, %p223_p8 }
   0xd   : > { %p256_p10 = scmp.lt.s32.totalorder (!%p224_p9), %s763_s25, 1  ;;  %s253_s10 = sand.u32 (!%p224_p9), 1, %s693_s22  }
   0xe   : > { %227 = sbr.rel (%p224_p9) target bundleno = 464 (0x1d0), region = 44  ;;  %s706_s19 = smov (!%p224_p9), [#allocation2]  }
  0x13   : > { %v267_v0 = vld [vmem:[%s858_s2] sm:$0xf]  ;;  %vm279_vm0 = vcmask 1043456   ;;  %v703_v1 = vmov 0.0   ;;  %vm704_vm1 = vmmov 0   ;;  %s257_s11 = scalar_select %p256_p10, %s763_s25, 1  ;;  %v343_v32 = vlaneseq }
  0x14   : > { %582 = vmatprep.subr.bf16.mxu0 %v703_v1  ;;  %v281_v2 = vsel %vm279_vm0, %v267_v0, 0  ;;  %584 = vmatprep.mubr.msk.bf16.mxu0 %vm704_vm1, %v703_v1  ;;  %vm275_vm2 = vcmask 64512   ;;  %v638_v5 = vld [vmem:[%s860_s4] sm:$0xff]   ;;  %v705_v7 = vmov 0   ;;  %vm431_vm11 = vcmask 130048  }
  0x15   : > { %583 = vmatpush3.bf16.msra.mxu0 %v281_v2  ;;  %588 = vmatprep.subr.bf16.mxu1 %v703_v1  ;;  %s568_s12 = sshll.u32 %s257_s11, 3  ;;  %v570_v16 = vld [vmem:[%s859_s3] ss:$0 sm:$0xff]  ;;  %v344_v33 = vshrl.u32 %v343_v32, 7  ;;  %s567_s11 = sshll.u32 %s253_s10, 2 }
  0x16   : > { %590 = vmatprep.mubr.msk.bf16.mxu1 %vm704_vm1, %v703_v1  ;;  %s259_s15 = scalar_lea.vmem %s856_s0, %s568_s12  ;;  %589 = vmatpush3.bf16.msra.mxu1 %v638_v5  ;;  %s263_s20 = scalar_lea.vmem %s857_s1, %s568_s12  ;;  %v336_v35 = vld [vmem:[%s861_s5] sm:$0xff] }
  0x17   : > { %v265_v3 = vld [vmem:[%s259_s15] sm:$0xff]  ;;  %636 = vset.pattern.permute.xlu0 %v705_v7  ;;  %637 = vset.pattern.permute.xlu1 %v705_v7  ;;  %v345_v34 = vsub.s32 0, %v344_v33  ;;  %v356_v37 = vsub.s32 1, %v344_v33  ;;  %v367_v40 = vsub.s32 2, %v344_v33  ;;  %v378_v44 = vsub.s32 3, %v344_v33  ;;  %s575_s12 = sshll.u32 %s763_s25, 6 }
  0x18   : > { %v266_v4 = vpack.c.bf16 %v265_v3, %v265_v3  ;;  %v335_v6 = vld [vmem:[%s263_s20] sm:$0xff]  ;;  %v389_v48 = vsub.s32 4, %v344_v33  ;;  %v400_v52 = vsub.s32 5, %v344_v33  ;;  %v411_v56 = vsub.s32 6, %v344_v33  ;;  %s255_s13 = scalar_lea.vmem [#allocation2], %s567_s11  ;;  %s815_s17 = scalar_lea.hbm %s862_s6, %s575_s12 }
  0x19   : > { %vm337_vm3 = vcmp.eq.s32.totalorder %v335_v6, 0  ;;  %vm359_vm4 = vcmp.eq.s32.totalorder %v335_v6, 2  ;;  %vm348_vm5 = vcmp.eq.s32.totalorder %v335_v6, 1  ;;  %vm370_vm6 = vcmp.eq.s32.totalorder %v335_v6, 3  ;;  %s492_s14 = sshll.u32 %s255_s13, 4  ;;  %s479_s25 = scalar_lea.sflag [#allocation3], %s253_s10  ;;  %s817_s14 = int_to_ptr.vmem [resolvable:$true] %s492_s14 }
  0x1a   : > { %585 = vmatmul.mubr.msk.bf16.vlgmr.msra.gmra.mxu0 %vm275_vm2, %v266_v4  ;;  %v338_v8 = vsel %vm337_vm3, 1, %v705_v7  ;;  %v360_v9 = vsel %vm359_vm4, 1, %v705_v7  ;;  %v349_v10 = vsel %vm348_vm5, 1, %v705_v7  ;;  %v371_v11 = vsel %vm370_vm6, 1, %v705_v7  ;;  %s641_s18 = scalar_lea.vmem %s817_s14, 64  ;;  %s645_s20 = sshll.u32 %s706_s19, 4  ;;  %s646_s20 = int_to_ptr.vmem [resolvable:$false] %s645_s20 }
  0x1b   : > { %340 = vperm.xlu0 %636, %v338_v8   ;;  %362 = vperm.xlu1 %637, %v360_v9   ;;  %vm381_vm7 = vcmp.eq.s32.totalorder %v335_v6, 4  ;;  %vm392_vm8 = vcmp.eq.s32.totalorder %v335_v6, 5  ;;  %vm403_vm9 = vcmp.eq.s32.totalorder %v335_v6, 6  ;;  %vm414_vm10 = vcmp.eq.s32.totalorder %v335_v6, 7  ;;  %p642_p11 = scmp.ne.s32.totalorder %s817_s14, %s641_s18  ;;  %s647_s26 = scalar_lea.vmem %s646_s20, 128 }
  0x1c   : > { %v382_v12 = vsel %vm381_vm7, 1, %v705_v7  ;;  %v393_v13 = vsel %vm392_vm8, 1, %v705_v7  ;;  %v404_v14 = vsel %vm403_vm9, 1, %v705_v7  ;;  %v415_v15 = vsel %vm414_vm10, 1, %v705_v7  ;;  %p648_p0 = scmp.lt.s32.totalorder %s817_s14, %s646_s20  ;;  %p649_p1 = scmp.lt.s32.totalorder %s647_s26, %s641_s18 }
  0x1d   : > { %v346_v38 = vrot.slane %v336_v35, %v345_v34  ;;  %v357_v41 = vrot.slane %v336_v35, %v356_v37  ;;  %v368_v45 = vrot.slane %v336_v35, %v367_v40  ;;  %v379_v49 = vrot.slane %v336_v35, %v378_v44  ;;  %p643_p12 = pnand %p642_p11, %p780_p5 }
  0x1e   : > { %v390_v53 = vrot.slane %v336_v35, %v389_v48  ;;  %v401_v57 = vrot.slane %v336_v35, %v400_v52  ;;  %v422_v60 = vsub.s32 7, %v344_v33  ;;  %v412_v61 = vrot.slane %v336_v35, %v411_v56  ;;  %p650_p2 = por %p649_p1, %p648_p0 }
  0x1f   : > { %351 = vperm.xlu0 %636, %v349_v10   ;;  %373 = vperm.xlu1 %637, %v371_v11   ;;  %vm476_vm4 = vcmask 257024   ;;  %p644_p13 = pneg %p643_p12 }
  0x20   : > { %v423_v0 = vrot.slane %v336_v35, %v422_v60 }
  0x21   : > { %p651_p3 = pnand %p650_p2, %p644_p13 }
  0x23   : > { %384 = vperm.xlu0 %636, %v382_v12   ;;  %395 = vperm.xlu1 %637, %v393_v13  }
  0x27   : > { %406 = vperm.xlu0 %636, %v404_v14   ;;  %417 = vperm.xlu1 %637, %v415_v15  }
  0x96   : > { %v341_v36 = vpop.permute.xlu0 %340  ;;  %v363_v39 = vpop.permute.xlu1 %362 }
  0x97   : > { %vm342_vm12 = vcmp.eq.s32.totalorder %v341_v36, 1  ;;  %vm364_vm14 = vcmp.eq.s32.totalorder %v363_v39, 1 }
  0x98   : > { %v347_v43 = vsel %vm342_vm12, %v346_v38, 0.0 }
  0x9a   : > { %v352_v42 = vpop.permute.xlu0 %351  ;;  %v374_v47 = vpop.permute.xlu1 %373 }
  0x9b   : > { %vm353_vm13 = vcmp.eq.s32.totalorder %v352_v42, 1  ;;  %vm375_vm15 = vcmp.eq.s32.totalorder %v374_v47, 1 }
  0x9c   : > { %v358_v46 = vsel %vm353_vm13, %v357_v41, %v347_v43 }
  0x9d   : > { %v369_v50 = vsel %vm364_vm14, %v368_v45, %v358_v46 }
  0x9e   : > { %v385_v51 = vpop.permute.xlu0 %384  ;;  %v380_v54 = vsel %vm375_vm15, %v379_v49, %v369_v50  ;;  %v396_v55 = vpop.permute.xlu1 %395 }
  0x9f   : > { %vm386_vm0 = vcmp.eq.s32.totalorder %v385_v51, 1  ;;  %vm397_vm1 = vcmp.eq.s32.totalorder %v396_v55, 1 }
  0xa0   : > { %v391_v58 = vsel %vm386_vm0, %v390_v53, %v380_v54 }
  0xa1   : > { %v402_v62 = vsel %vm397_vm1, %v401_v57, %v391_v58 }
  0xa2   : > { %v407_v59 = vpop.permute.xlu0 %406  ;;  %v418_v63 = vpop.permute.xlu1 %417 }
  0xa3   : > { %vm408_vm2 = vcmp.eq.s32.totalorder %v407_v59, 1  ;;  %vm419_vm3 = vcmp.eq.s32.totalorder %v418_v63, 1 }
  0xa4   : > { %v413_v1 = vsel %vm408_vm2, %v412_v61, %v402_v62 }
  0xa5   : > { %v424_v2 = vsel %vm419_vm3, %v423_v0, %v413_v1 }
  0xda   : > { %v317_v17 = vpop.f32.mrf.mxu0 }
  0xdb   : > { %v318_v18 = vadd.f32 %v570_v16, %v317_v17 }
  0xdc   : > { %v586_v19 = vpop.f32.mrf.mxu0 }
  0xdd   : > { %v323_v20 = vmul.f32 %v318_v18, %v318_v18 }
  0xde   : > { %v320_v21 = vpop.f32.mrf.mxu0 }
  0xdf   : > { %v324_v22 = vmul.f32 %v323_v20, %v318_v18 }
  0xe0   : > { %v587_v23 = vpop.f32.mrf.mxu0 }
  0xe1   : > { %v325_v24 = vmul.f32 0.044715, %v324_v22 }
  0xe3   : > { %v326_v25 = vadd.f32 %v325_v24, %v318_v18 }
  0xe5   : > { %v327_v26 = vmul.f32 0.7978846, %v326_v25 }
  0xe7   : > { %639 = vtanh.f32 %v327_v26 }
  0xf4   : > { %v640_v27 = vpop.eup %639 }
  0xf5   : > { %v329_v28 = vadd.f32 1.0, %v640_v27 }
  0xf7   : > { %v330_v29 = vmul.f32 0.5, %v329_v28 }
  0xf9   : > { %v331_v30 = vmul.f32 %v330_v29, %v318_v18 }
  0xfb   : > { %v332_v31 = vpack.c.bf16 %v331_v30, %v331_v30 }
  0xfd   : > { %591 = vmatmul.mubr.msk.bf16.vlgmr.msra.gmra.mxu1 %vm431_vm11, %v332_v31 }
 0x1bd   : > { %v469_v3 = vpop.f32.mrf.mxu1 }
 0x1be   : > { %v470_v4 = vadd.f32 %v469_v3, %v424_v2 }
 0x1bf   : > { %v592_v5 = vpop.f32.mrf.mxu1 }
 0x1c0   : > { %v475_v6 = vpack.c.bf16 %v470_v4, %v470_v4 }
 0x1c1   : > { %v472_v7 = vpop.f32.mrf.mxu1 }
 0x1c2   : > { %477 = vst.msk [vmem:[%s255_s13] sm:$0xf] %vm476_vm4, %v475_v6 }
 0x1c3   : > { %v593_v8 = vpop.f32.mrf.mxu1 }
 0x1c4   : > { %654 = shalt.err (!%p651_p3)
}
 0x1c5   : > { %s655_s28 = scalar_lea.hbm %s815_s17, 64  ;;  %s659_s10 = scalar_lea.hbm %s862_s6, 128 }
 0x1c6   : > { %p656_p4 = scmp.ne.s32.totalorder %s815_s17, %s655_s28  ;;  %p660_p9 = scmp.lt.s32.totalorder %s815_s17, %s862_s6 }
 0x1c7   : > { %p661_p10 = scmp.lt.s32.totalorder %s659_s10, %s655_s28 }
 0x1c8   : > { %p657_p7 = pnand %p656_p4, %p780_p5 }
 0x1c9   : > { %p662_p11 = por %p661_p10, %p660_p9 }
 0x1ca   : > { %p658_p8 = pneg %p657_p7 }
 0x1cc   : > { %p663_p12 = pnand %p662_p11, %p658_p8 }
 0x1ce   : > { %666 = shalt.err (!%p663_p12)
}
 0x1cf   : > { %594 = dma.vmem_to_hbm [thread:$0]  (%p780_p5), %s817_s14, 64, %s815_s17, %s479_s25  }
 0x1d0 PF: > { %p600_p13 = scmp.ge.s32.totalorder %s701_s24, 2  ;;  %s504_s13 = sand.u32 1, %s689_s21  }
 0x1d1   : > { %s505_s15 = scalar_lea.sflag [#allocation3], %s504_s13 }
 0x1d2   : > { %p597_p0 = pnand %p600_p13, %p784_p6 }
 0x1d4   : > { %p598_p1 = pneg %p597_p0 }
 0x1d6   : > { %684 = dma.done.wait (%p598_p1), %s505_s15, 64  }
 0x1d7   : > { %686 = vsyncadd (%p598_p1), %s505_s15, 4294967232  ;;  %p16_p2 = scmp.ge.s32.totalorder %s767_s27, 4   ;;  %s865_s21 = smov %s693_s22 }
 0x1d8   : > { %s866_s22 = smov %s697_s23  ;;  %s867_s23 = smov %s778_s30 }
 0x1d9   : > { %s868_s24 = smov %s767_s27  ;;  %18 = sbr.rel (!%p16_p2) target bundleno = 3 (0x3), region = 82 }
 0x1de   :  { %510 = vsyncpa [#allocation3], 1 }
 0x1df   :  { %512 = vsyncpa [#allocation3 + $0x1], 1 }

// kernel: tpu_custom_call.1
= control target key start
LH: loop header
LB: loop body
LE: loop exit
PB: predicated region body
PF: predicated region fallthrough
CT: control target
= control target key end

     0   :  { %11 = vsyncpa [#allocation3], 0  ;;  %s856_s0 = inlined_call_operand.vmem [shape: f32[16,8], index: 0, kind: input, shape index: {}]   ;;  %s857_s1 = inlined_call_operand.vmem [shape: s32[16,1], index: 1, kind: input, shape index: {}]   ;;  %s858_s2 = inlined_call_operand.vmem [shape: bf16[8,16], index: 2, kind: input, shape index: {}]   ;;  %s859_s3 = inlined_call_operand.vmem [shape: f32[1,16], index: 3, kind: input, shape index: {}]   ;;  %s860_s4 = inlined_call_operand.vmem [shape: bf16[16,32], index: 4, kind: input, shape index: {}]   ;;  %s861_s5 = inlined_call_operand.vmem [shape: f32[8,32], index: 5, kind: input, shape index: {}]   ;;  %s862_s6 = inlined_call_operand.hbm [shape: bf16[16,32], index: 6, kind: output, shape index: {}]  }
   0x1   :  { %13 = vsyncpa [#allocation3 + $0x1], 0  ;;  %s742_s21 = smov 0   ;;  %s744_s22 = smov 0  }
   0x2   :  { %s746_s23 = smov 0   ;;  %s748_s24 = smov 0  }
   0x3 LB: > { %s763_s25 = sadd.s32 4294967295, %s701_s24   ;;  %s563_s26 = sadd.s32 4294967294, %s701_s24   ;;  %s701_s24 = sphi %s748_s24, %s868_s24   ;;  %s697_s23 = sphi %s746_s23, %s867_s23   ;;  %s693_s22 = sphi %s744_s22, %s866_s22   ;;  %s689_s21 = sphi %s742_s21, %s865_s21  }
   0x4   : > { %s767_s27 = sadd.s32 1, %s701_s24   ;;  %s162_s28 = sadd.s32 1, %s697_s23 }
   0x5   : > { %s159_s29 = ssub.s32 %s701_s24, %s767_s27  ;;  %p172_p0 = scmp.ne.s32.totalorder %s697_s23, %s693_s22 }
   0x6   : > { %p160_p1 = scmp.eq.s32.totalorder %s159_s29, 0  ;;  %p173_p2 = scmp.eq.s32.totalorder %s763_s25, 1 }
   0x7   : > { %p178_p3 = scmp.ne.s32.totalorder %s693_s22, %s689_s21  ;;  %p179_p4 = scmp.eq.s32.totalorder %s563_s26, 1 }
   0x8   : > { %s778_s30 = scalar_select %p160_p1, %s697_s23, %s162_s28  }
   0x9   : > { %p780_p5 = por %p173_p2, %p172_p0  ;;  %p784_p6 = por %p179_p4, %p178_p3 }
   0xa   : > { %p566_p7 = scmp.ge.s32.totalorder %s701_s24, 1  ;;  %p223_p8 = scmp.lt.s32.totalorder %s701_s24, 3 }
   0xc   : > { %p224_p9 = pnand %p566_p7, %p223_p8 }
   0xd   : > { %p256_p10 = scmp.lt.s32.totalorder (!%p224_p9), %s763_s25, 1  ;;  %s253_s10 = sand.u32 (!%p224_p9), 1, %s693_s22  }
   0xe   : > { %227 = sbr.rel (%p224_p9) target bundleno = 464 (0x1d0), region = 44  ;;  %s706_s19 = smov (!%p224_p9), [#allocation2]  }
  0x13   : > { %v267_v0 = vld [vmem:[%s858_s2] sm:$0xf]  ;;  %vm279_vm0 = vcmask 1043456   ;;  %v703_v1 = vmov 0.0   ;;  %vm704_vm1 = vmmov 0   ;;  %s257_s11 = scalar_select %p256_p10, %s763_s25, 1  ;;  %v343_v32 = vlaneseq }
  0x14   : > { %582 = vmatprep.subr.bf16.mxu0 %v703_v1  ;;  %v281_v2 = vsel %vm279_vm0, %v267_v0, 0  ;;  %584 = vmatprep.mubr.msk.bf16.mxu0 %vm704_vm1, %v703_v1  ;;  %vm275_vm2 = vcmask 64512   ;;  %v638_v5 = vld [vmem:[%s860_s4] sm:$0xff]   ;;  %v705_v7 = vmov 0   ;;  %vm431_vm11 = vcmask 130048  }
  0x15   : > { %583 = vmatpush3.bf16.msra.mxu0 %v281_v2  ;;  %588 = vmatprep.subr.bf16.mxu1 %v703_v1  ;;  %s568_s12 = sshll.u32 %s257_s11, 3  ;;  %v570_v16 = vld [vmem:[%s859_s3] ss:$0 sm:$0xff]  ;;  %v344_v33 = vshrl.u32 %v343_v32, 7  ;;  %s567_s11 = sshll.u32 %s253_s10, 2 }
  0x16   : > { %590 = vmatprep.mubr.msk.bf16.mxu1 %vm704_vm1, %v703_v1  ;;  %s259_s15 = scalar_lea.vmem %s856_s0, %s568_s12  ;;  %589 = vmatpush3.bf16.msra.mxu1 %v638_v5  ;;  %s263_s20 = scalar_lea.vmem %s857_s1, %s568_s12  ;;  %v336_v35 = vld [vmem:[%s861_s5] sm:$0xff] }
  0x17   : > { %v265_v3 = vld [vmem:[%s259_s15] sm:$0xff]  ;;  %636 = vset.pattern.permute.xlu0 %v705_v7  ;;  %637 = vset.pattern.permute.xlu1 %v705_v7  ;;  %v345_v34 = vsub.s32 0, %v344_v33  ;;  %v356_v37 = vsub.s32 1, %v344_v33  ;;  %v367_v40 = vsub.s32 2, %v344_v33  ;;  %v378_v44 = vsub.s32 3, %v344_v33  ;;  %s575_s12 = sshll.u32 %s763_s25, 6 }
  0x18   : > { %v266_v4 = vpack.c.bf16 %v265_v3, %v265_v3  ;;  %v335_v6 = vld [vmem:[%s263_s20] sm:$0xff]  ;;  %v389_v48 = vsub.s32 4, %v344_v33  ;;  %v400_v52 = vsub.s32 5, %v344_v33  ;;  %v411_v56 = vsub.s32 6, %v344_v33  ;;  %s255_s13 = scalar_lea.vmem [#allocation2], %s567_s11  ;;  %s815_s17 = scalar_lea.hbm %s862_s6, %s575_s12 }
  0x19   : > { %vm337_vm3 = vcmp.eq.s32.totalorder %v335_v6, 0  ;;  %vm359_vm4 = vcmp.eq.s32.totalorder %v335_v6, 2  ;;  %vm348_vm5 = vcmp.eq.s32.totalorder %v335_v6, 1  ;;  %vm370_vm6 = vcmp.eq.s32.totalorder %v335_v6, 3  ;;  %s492_s14 = sshll.u32 %s255_s13, 4  ;;  %s479_s25 = scalar_lea.sflag [#allocation3], %s253_s10  ;;  %s817_s14 = int_to_ptr.vmem [resolvable:$true] %s492_s14 }
  0x1a   : > { %585 = vmatmul.mubr.msk.bf16.vlgmr.msra.gmra.mxu0 %vm275_vm2, %v266_v4  ;;  %v338_v8 = vsel %vm337_vm3, 1, %v705_v7  ;;  %v360_v9 = vsel %vm359_vm4, 1, %v705_v7  ;;  %v349_v10 = vsel %vm348_vm5, 1, %v705_v7  ;;  %v371_v11 = vsel %vm370_vm6, 1, %v705_v7  ;;  %s641_s18 = scalar_lea.vmem %s817_s14, 64  ;;  %s645_s20 = sshll.u32 %s706_s19, 4  ;;  %s646_s20 = int_to_ptr.vmem [resolvable:$false] %s645_s20 }
  0x1b   : > { %340 = vperm.xlu0 %636, %v338_v8   ;;  %362 = vperm.xlu1 %637, %v360_v9   ;;  %vm381_vm7 = vcmp.eq.s32.totalorder %v335_v6, 4  ;;  %vm392_vm8 = vcmp.eq.s32.totalorder %v335_v6, 5  ;;  %vm403_vm9 = vcmp.eq.s32.totalorder %v335_v6, 6  ;;  %vm414_vm10 = vcmp.eq.s32.totalorder %v335_v6, 7  ;;  %p642_p11 = scmp.ne.s32.totalorder %s817_s14, %s641_s18  ;;  %s647_s26 = scalar_lea.vmem %s646_s20, 128 }
  0x1c   : > { %v382_v12 = vsel %vm381_vm7, 1, %v705_v7  ;;  %v393_v13 = vsel %vm392_vm8, 1, %v705_v7  ;;  %v404_v14 = vsel %vm403_vm9, 1, %v705_v7  ;;  %v415_v15 = vsel %vm414_vm10, 1, %v705_v7  ;;  %p648_p0 = scmp.lt.s32.totalorder %s817_s14, %s646_s20  ;;  %p649_p1 = scmp.lt.s32.totalorder %s647_s26, %s641_s18 }
  0x1d   : > { %v346_v38 = vrot.slane %v336_v35, %v345_v34  ;;  %v357_v41 = vrot.slane %v336_v35, %v356_v37  ;;  %v368_v45 = vrot.slane %v336_v35, %v367_v40  ;;  %v379_v49 = vrot.slane %v336_v35, %v378_v44  ;;  %p643_p12 = pnand %p642_p11, %p780_p5 }
  0x1e   : > { %v390_v53 = vrot.slane %v336_v35, %v389_v48  ;;  %v401_v57 = vrot.slane %v336_v35, %v400_v52  ;;  %v422_v60 = vsub.s32 7, %v344_v33  ;;  %v412_v61 = vrot.slane %v336_v35, %v411_v56  ;;  %p650_p2 = por %p649_p1, %p648_p0 }
  0x1f   : > { %351 = vperm.xlu0 %636, %v349_v10   ;;  %373 = vperm.xlu1 %637, %v371_v11   ;;  %vm476_vm4 = vcmask 257024   ;;  %p644_p13 = pneg %p643_p12 }
  0x20   : > { %v423_v0 = vrot.slane %v336_v35, %v422_v60 }
  0x21   : > { %p651_p3 = pnand %p650_p2, %p644_p13 }
  0x23   : > { %384 = vperm.xlu0 %636, %v382_v12   ;;  %395 = vperm.xlu1 %637, %v393_v13  }
  0x27   : > { %406 = vperm.xlu0 %636, %v404_v14   ;;  %417 = vperm.xlu1 %637, %v415_v15  }
  0x96   : > { %v341_v36 = vpop.permute.xlu0 %340  ;;  %v363_v39 = vpop.permute.xlu1 %362 }
  0x97   : > { %vm342_vm12 = vcmp.eq.s32.totalorder %v341_v36, 1  ;;  %vm364_vm14 = vcmp.eq.s32.totalorder %v363_v39, 1 }
  0x98   : > { %v347_v43 = vsel %vm342_vm12, %v346_v38, 0.0 }
  0x9a   : > { %v352_v42 = vpop.permute.xlu0 %351  ;;  %v374_v47 = vpop.permute.xlu1 %373 }
  0x9b   : > { %vm353_vm13 = vcmp.eq.s32.totalorder %v352_v42, 1  ;;  %vm375_vm15 = vcmp.eq.s32.totalorder %v374_v47, 1 }
  0x9c   : > { %v358_v46 = vsel %vm353_vm13, %v357_v41, %v347_v43 }
  0x9d   : > { %v369_v50 = vsel %vm364_vm14, %v368_v45, %v358_v46 }
  0x9e   : > { %v385_v51 = vpop.permute.xlu0 %384  ;;  %v380_v54 = vsel %vm375_vm15, %v379_v49, %v369_v50  ;;  %v396_v55 = vpop.permute.xlu1 %395 }
  0x9f   : > { %vm386_vm0 = vcmp.eq.s32.totalorder %v385_v51, 1  ;;  %vm397_vm1 = vcmp.eq.s32.totalorder %v396_v55, 1 }
  0xa0   : > { %v391_v58 = vsel %vm386_vm0, %v390_v53, %v380_v54 }
  0xa1   : > { %v402_v62 = vsel %vm397_vm1, %v401_v57, %v391_v58 }
  0xa2   : > { %v407_v59 = vpop.permute.xlu0 %406  ;;  %v418_v63 = vpop.permute.xlu1 %417 }
  0xa3   : > { %vm408_vm2 = vcmp.eq.s32.totalorder %v407_v59, 1  ;;  %vm419_vm3 = vcmp.eq.s32.totalorder %v418_v63, 1 }
  0xa4   : > { %v413_v1 = vsel %vm408_vm2, %v412_v61, %v402_v62 }
  0xa5   : > { %v424_v2 = vsel %vm419_vm3, %v423_v0, %v413_v1 }
  0xda   : > { %v317_v17 = vpop.f32.mrf.mxu0 }
  0xdb   : > { %v318_v18 = vadd.f32 %v570_v16, %v317_v17 }
  0xdc   : > { %v586_v19 = vpop.f32.mrf.mxu0 }
  0xdd   : > { %v323_v20 = vmul.f32 %v318_v18, %v318_v18 }
  0xde   : > { %v320_v21 = vpop.f32.mrf.mxu0 }
  0xdf   : > { %v324_v22 = vmul.f32 %v323_v20, %v318_v18 }
  0xe0   : > { %v587_v23 = vpop.f32.mrf.mxu0 }
  0xe1   : > { %v325_v24 = vmul.f32 0.044715, %v324_v22 }
  0xe3   : > { %v326_v25 = vadd.f32 %v325_v24, %v318_v18 }
  0xe5   : > { %v327_v26 = vmul.f32 0.7978846, %v326_v25 }
  0xe7   : > { %639 = vtanh.f32 %v327_v26 }
  0xf4   : > { %v640_v27 = vpop.eup %639 }
  0xf5   : > { %v329_v28 = vadd.f32 1.0, %v640_v27 }
  0xf7   : > { %v330_v29 = vmul.f32 0.5, %v329_v28 }
  0xf9   : > { %v331_v30 = vmul.f32 %v330_v29, %v318_v18 }
  0xfb   : > { %v332_v31 = vpack.c.bf16 %v331_v30, %v331_v30 }
  0xfd   : > { %591 = vmatmul.mubr.msk.bf16.vlgmr.msra.gmra.mxu1 %vm431_vm11, %v332_v31 }
 0x1bd   : > { %v469_v3 = vpop.f32.mrf.mxu1 }
 0x1be   : > { %v470_v4 = vadd.f32 %v469_v3, %v424_v2 }
 0x1bf   : > { %v592_v5 = vpop.f32.mrf.mxu1 }
 0x1c0   : > { %v475_v6 = vpack.c.bf16 %v470_v4, %v470_v4 }
 0x1c1   : > { %v472_v7 = vpop.f32.mrf.mxu1 }
 0x1c2   : > { %477 = vst.msk [vmem:[%s255_s13] sm:$0xf] %vm476_vm4, %v475_v6 }
 0x1c3   : > { %v593_v8 = vpop.f32.mrf.mxu1 }
 0x1c4   : > { %654 = shalt.err (!%p651_p3)
}
 0x1c5   : > { %s655_s28 = scalar_lea.hbm %s815_s17, 64  ;;  %s659_s10 = scalar_lea.hbm %s862_s6, 128 }
 0x1c6   : > { %p656_p4 = scmp.ne.s32.totalorder %s815_s17, %s655_s28  ;;  %p660_p9 = scmp.lt.s32.totalorder %s815_s17, %s862_s6 }
 0x1c7   : > { %p661_p10 = scmp.lt.s32.totalorder %s659_s10, %s655_s28 }
 0x1c8   : > { %p657_p7 = pnand %p656_p4, %p780_p5 }
 0x1c9   : > { %p662_p11 = por %p661_p10, %p660_p9 }
 0x1ca   : > { %p658_p8 = pneg %p657_p7 }
 0x1cc   : > { %p663_p12 = pnand %p662_p11, %p658_p8 }
 0x1ce   : > { %666 = shalt.err (!%p663_p12)
}
 0x1cf   : > { %594 = dma.vmem_to_hbm [thread:$0]  (%p780_p5), %s817_s14, 64, %s815_s17, %s479_s25  }
 0x1d0 PF: > { %p600_p13 = scmp.ge.s32.totalorder %s701_s24, 2  ;;  %s504_s13 = sand.u32 1, %s689_s21  }
 0x1d1   : > { %s505_s15 = scalar_lea.sflag [#allocation3], %s504_s13 }
 0x1d2   : > { %p597_p0 = pnand %p600_p13, %p784_p6 }
 0x1d4   : > { %p598_p1 = pneg %p597_p0 }
 0x1d6   : > { %684 = dma.done.wait (%p598_p1), %s505_s15, 64  }
 0x1d7   : > { %686 = vsyncadd (%p598_p1), %s505_s15, 4294967232  ;;  %p16_p2 = scmp.ge.s32.totalorder %s767_s27, 4   ;;  %s865_s21 = smov %s693_s22 }
 0x1d8   : > { %s866_s22 = smov %s697_s23  ;;  %s867_s23 = smov %s778_s30 }
 0x1d9   : > { %s868_s24 = smov %s767_s27  ;;  %18 = sbr.rel (!%p16_p2) target bundleno = 3 (0x3), region = 82 }
 0x1de   :  { %510 = vsyncpa [#allocation3], 1 }
 0x1df   :  { %512 = vsyncpa [#allocation3 + $0x1], 1 }

</bundles_post_ra>
